<compile_context>
chip_gen: v7x
topology: tpu7x:2x2x1
jax: 0.10.0
libtpu: 0.0.40
codegen_flags: <defaults>
</compile_context>

<pallas_src>
from functools import partial

import jax
import jax.numpy as jnp
from jax.experimental import pallas as pl
from jax.experimental.pallas import tpu as pltpu


# ------------------------------ Pallas kernel ------------------------------ #

def _fused_seg_kernel(f_ref, ml_ref, mr_ref, w1_ref, w2_ref, b2_ref,
                      w3_ref, b3_ref, o_ref, p_ref, *, width):
    """backbone(3x3 conv, bias folded) + ReLU -> neck(1x1)+ReLU -> head(1x1).

    One image per grid step; everything is in (channels, pixels) layout so the
    lane axis is H*W (lane-dense).  im2col is built in-kernel from the
    flattened, H-padded image via 9 lane rolls.

      f_ref : (Cin, LPAD) bf16   [0 | x_padH.flatten() | 0...], LPAD % 128 == 0
      ml_ref: (1, HW)     f32    0 where pixel column == 0     (mask for kx==0)
      mr_ref: (1, HW)     f32    0 where pixel column == W-1   (mask for kx==2)
      w1_ref: (Cb, KPAD)  bf16   [3x3 conv weights | bias column | zeros]
      w2_ref: (Cn, Cb)    bf16
      b2_ref: (Cn, 1)     f32
      w3_ref: (NC, Cn)    bf16
      b3_ref: (NC, 1)     f32
      o_ref : (NC, HW)    f32    per-pixel logits
      p_ref : (KPAD, HW)  f32    scratch: im2col patch matrix (+ ones bias row)
    """
    cin, lpad = f_ref.shape
    hw = o_ref.shape[-1]
    kpad = p_ref.shape[0]

    f = f_ref[...].astype(jnp.float32)                      # (Cin, LPAD)
    ml = ml_ref[...]                                        # (1, HW)
    mr = mr_ref[...]

    # Initialize the patch scratch: zeros everywhere, ones on the bias row.
    rows = jax.lax.broadcasted_iota(jnp.int32, (kpad, hw), 0)
    p_ref[...] = jnp.where(rows == 9 * cin, 1.0, 0.0).astype(jnp.float32)

    # In-kernel im2col: with the wrapper's layout, tap (ky, kx) of output pixel
    # p is F[p + ky*W + kx]; W-wraparound at kx==0 / kx==2 is zeroed via masks,
    # H-boundary zeros come from the H padding baked into F.
    for ky in range(3):
        for kx in range(3):
            s = ky * width + kx
            shifted = f if s == 0 else pltpu.roll(f, lpad - s, 1)
            tap = shifted[:, :hw]                           # aligned lane slice
            if kx == 0:
                tap = tap * ml
            elif kx == 2:
                tap = tap * mr
            t = ky * 3 + kx
            p_ref[t * cin:(t + 1) * cin, :] = tap

    patches = p_ref[...].astype(jnp.bfloat16)               # (KPAD, HW)

    # backbone: ONE K=KPAD MXU matmul (conv + folded bias), then ReLU.
    h1 = jnp.dot(w1_ref[...], patches, preferred_element_type=jnp.float32)
    h1 = jnp.maximum(h1, 0.0)                               # (Cb, HW) f32

    # neck: 1x1 conv + bias + ReLU (intermediate stays on-chip).
    h2 = jnp.dot(w2_ref[...], h1.astype(jnp.bfloat16),
                 preferred_element_type=jnp.float32) + b2_ref[...]
    h2 = jnp.maximum(h2, 0.0)                               # (Cn, HW) f32

    # head: 1x1 conv + bias -> logits (lane-dense (NC, HW) store).
    out = jnp.dot(w3_ref[...], h2.astype(jnp.bfloat16),
                  preferred_element_type=jnp.float32) + b3_ref[...]
    o_ref[...] = out.astype(o_ref.dtype)


def _fused_forward_pallas(f, mask_l, mask_r, w1p, w2T, b2, w3T, b3, *, width):
    """f: (N, Cin, LPAD) bf16 -> logits (N, NC, HW) f32."""
    N, Cin, LPAD = f.shape
    HW = mask_l.shape[-1]
    Cb, KPAD = w1p.shape
    Cn = w2T.shape[0]
    NC = w3T.shape[0]
    return pl.pallas_call(
        partial(_fused_seg_kernel, width=width),
        out_shape=jax.ShapeDtypeStruct((N, NC, HW), jnp.float32),
        grid=(N,),
        in_specs=[
            pl.BlockSpec((None, Cin, LPAD), lambda n: (n, 0, 0)),   # image
            pl.BlockSpec((1, HW), lambda n: (0, 0)),                # left mask
            pl.BlockSpec((1, HW), lambda n: (0, 0)),                # right mask
            pl.BlockSpec((Cb, KPAD), lambda n: (0, 0)),             # w1 (+bias)
            pl.BlockSpec((Cn, Cb), lambda n: (0, 0)),
            pl.BlockSpec((Cn, 1), lambda n: (0, 0)),
            pl.BlockSpec((NC, Cn), lambda n: (0, 0)),
            pl.BlockSpec((NC, 1), lambda n: (0, 0)),
        ],
        out_specs=pl.BlockSpec((None, NC, HW), lambda n: (n, 0, 0)),
        scratch_shapes=[pltpu.VMEM((KPAD, HW), jnp.float32)],
        compiler_params=pltpu.CompilerParams(
            dimension_semantics=("parallel",)),
    )(f, mask_l, mask_r, w1p, w2T, b2, w3T, b3)


# ----------------------------- layout helpers ------------------------------ #

def _prep_image(x_nchw, lpad):
    """(N,Cin,H,W) f32 -> (N,Cin,LPAD) bf16 slab for in-kernel im2col.

    Cast to bf16 FIRST, zero-pad H by 1 on each side, flatten (H+2, W) row-major,
    then add one leading zero and trailing zeros up to LPAD (128-multiple).
    Real pixel (h, w) sits at flat index (h+1)*W + w + 1.
    """
    N, Cin, H, W = x_nchw.shape
    xb = x_nchw.astype(jnp.bfloat16)                         # bf16 before padding
    xp = jnp.pad(xb, ((0, 0), (0, 0), (1, 1), (0, 0)))
    flat = xp.reshape(N, Cin, (H + 2) * W)
    return jnp.pad(flat, ((0, 0), (0, 0), (1, lpad - 1 - (H + 2) * W)))


def _boundary_masks(H, W):
    """W-boundary masks (1, H*W) f32 used for the kx==0 / kx==2 taps."""
    col = jnp.arange(H * W, dtype=jnp.int32) % W
    mask_l = (col != 0).astype(jnp.float32)[None, :]
    mask_r = (col != W - 1).astype(jnp.float32)[None, :]
    return mask_l, mask_r


def _prep_params(params, kpad):
    """Reshape/cast parameters into the transposed bf16 kernel layout."""
    cb = params["backbone_w"].shape[-1]
    cin = params["backbone_w"].shape[2]
    # (3,3,Cin,Cb) HWIO -> (Cb, 9*Cin); column order (ky, kx, cin) matches the
    # in-kernel tap assembly order.  Bias folded in as column 9*Cin.
    w1 = params["backbone_w"].transpose(3, 0, 1, 2).reshape(cb, 9 * cin)
    b1 = params["backbone_b"].reshape(cb, 1)
    zpad = jnp.zeros((cb, kpad - 9 * cin - 1), w1.dtype)
    w1p = jnp.concatenate([w1, b1, zpad], axis=1).astype(jnp.bfloat16)   # (Cb, KPAD)
    w2T = params["neck_w"].T.astype(jnp.bfloat16)            # (Cn, Cb)
    b2 = params["neck_b"].reshape(-1, 1).astype(jnp.float32)
    w3T = params["head_w"].T.astype(jnp.bfloat16)             # (NC, Cn)
    b3 = params["head_b"].reshape(-1, 1).astype(jnp.float32)
    return w1p, w2T, b2, w3T, b3


# ---------------------------- SegmentationModel ----------------------------- #

def init_params(key, cin=4, cb=32, cn=32, num_classes=8):
    k1, k2, k3, k4, k5, k6 = jax.random.split(key, 6)
    return {
        "backbone_w": 0.1 * jax.random.normal(k1, (3, 3, cin, cb), jnp.float32),  # HWIO
        "backbone_b": 0.1 * jax.random.normal(k2, (cb,), jnp.float32),
        "neck_w":     0.1 * jax.random.normal(k3, (cb, cn), jnp.float32),
        "neck_b":     0.1 * jax.random.normal(k4, (cn,), jnp.float32),
        "head_w":     0.1 * jax.random.normal(k5, (cn, num_classes), jnp.float32),
        "head_b":     0.1 * jax.random.normal(k6, (num_classes,), jnp.float32),
    }


@jax.jit
def segmentation_model_forward(params, x_nchw):
    """Mirrors SegmentationModel.forward: backbone -> neck -> head.

    x_nchw: (N, Cin, H, W) f32  ->  logits (N, num_classes, H, W) f32.
    """
    N, Cin, H, W = x_nchw.shape
    lpad = ((H + 2) * W + 2 + 127) // 128 * 128        # flattened slab, 128-aligned
    kpad = ((9 * Cin + 1 + 15) // 16) * 16             # taps + bias row, bf16 granule

    f = _prep_image(x_nchw, lpad)
    mask_l, mask_r = _boundary_masks(H, W)
    w1p, w2T, b2, w3T, b3 = _prep_params(params, kpad)
    out = _fused_forward_pallas(f, mask_l, mask_r, w1p, w2T, b2, w3T, b3, width=W)
    # TODO(synk): head resize-to-label_size and loss-with-targets are task-config
    # dependent in the original repo and are not part of this kernel.
    # TODO(synk): at real resolutions, tile the H*W axis (per-generation tile
    # sizes: v7x has 64 MiB VMEM vs 128 MiB on v5e/v6e, set vmem_limit_bytes)
    # and pack several images' pixels per grid step on single-TC chips.
    return out.reshape(N, w3T.shape[0], H, W)          # pure reshape, no transpose


# ------------------------- pure-JAX references only ------------------------- #

def _reference_forward_bf16(params, x_nchw):
    """jnp reference reproducing the kernel's exact bf16/f32 numerics."""
    N, Cin, H, W = x_nchw.shape
    kpad = ((9 * Cin + 1 + 15) // 16) * 16
    xb = x_nchw.astype(jnp.bfloat16)
    xp = jnp.pad(xb, ((0, 0), (0, 0), (1, 1), (1, 1)))
    taps = [xp[:, :, ky:ky + H, kx:kx + W] for ky in range(3) for kx in range(3)]
    p = jnp.concatenate(taps, axis=1).reshape(N, 9 * Cin, H * W)        # bf16
    w1p, w2T, b2, w3T, b3 = _prep_params(params, kpad)
    w1T = w1p[:, :9 * Cin]
    b1 = w1p[:, 9 * Cin:9 * Cin + 1].astype(jnp.float32)                # bias as folded
    h1 = jnp.einsum("ck,nkp->ncp", w1T, p, preferred_element_type=jnp.float32) + b1
    h1 = jnp.maximum(h1, 0.0).astype(jnp.bfloat16)
    h2 = jnp.einsum("ck,nkp->ncp", w2T, h1, preferred_element_type=jnp.float32) + b2
    h2 = jnp.maximum(h2, 0.0).astype(jnp.bfloat16)
    out = jnp.einsum("ck,nkp->ncp", w3T, h2, preferred_element_type=jnp.float32) + b3
    return out.reshape(N, -1, H, W)


def _reference_forward_f32(params, x_nchw):
    """Full-f32 conv reference (semantic check; looser tolerance vs bf16 kernel)."""
    y = jax.lax.conv_general_dilated(
        x_nchw, params["backbone_w"], (1, 1), "SAME",
        dimension_numbers=("NCHW", "HWIO", "NCHW"))
    y = jnp.maximum(y + params["backbone_b"].reshape(1, -1, 1, 1), 0.0)
    y = jnp.maximum(jnp.einsum("nchw,cd->ndhw", y, params["neck_w"])
                    + params["neck_b"].reshape(1, -1, 1, 1), 0.0)
    y = jnp.einsum("nchw,cd->ndhw", y, params["head_w"]) \
        + params["head_b"].reshape(1, -1, 1, 1)
    return y


if __name__ == "__main__":
    key = jax.random.PRNGKey(0)
    k_x, k_p = jax.random.split(key)

    N, Cin, H, W = 2, 4, 16, 16
    NC = 8
    x = jax.random.normal(k_x, (N, Cin, H, W), jnp.float32)
    params = init_params(k_p, cin=Cin, cb=32, cn=32, num_classes=NC)

    out = jax.block_until_ready(segmentation_model_forward(params, x))
    assert out.shape == (N, NC, H, W), out.shape

    # tight check against a jnp path with identical bf16/f32 numerics
    ref_exact = _reference_forward_bf16(params, x)
    err_exact = float(jnp.max(jnp.abs(out - ref_exact)))
    assert jnp.allclose(out, ref_exact, atol=2e-3, rtol=2e-3), err_exact

    # semantic check against the full-f32 conv pipeline (bf16 quantization slack)
    ref_f32 = _reference_forward_f32(params, x)
    err_f32 = float(jnp.max(jnp.abs(out - ref_f32)))
    assert jnp.allclose(out, ref_f32, atol=5e-2, rtol=5e-2), err_f32

    print("KERNEL_OK")
</pallas_src>

<mosaic_0001>
module attributes {stable_mosaic.version = 11 : i64} {
  func.func @_fused_seg_kernel(%arg0: i32, %arg1: memref<1x4x384xbf16, #tpu.memory_space<vmem>>, %arg2: memref<1x256xf32, #tpu.memory_space<vmem>>, %arg3: memref<1x256xf32, #tpu.memory_space<vmem>>, %arg4: memref<32x48xbf16, #tpu.memory_space<vmem>>, %arg5: memref<32x32xbf16, #tpu.memory_space<vmem>>, %arg6: memref<32x1xf32, #tpu.memory_space<vmem>>, %arg7: memref<8x32xbf16, #tpu.memory_space<vmem>>, %arg8: memref<8x1xf32, #tpu.memory_space<vmem>>, %arg9: memref<1x8x256xf32, #tpu.memory_space<vmem>>, %arg10: memref<48x256xf32, #tpu.memory_space<vmem>>) attributes {dimension_semantics = [#tpu.dimension_semantics<parallel>], iteration_bounds = array<i64: 2>, scalar_prefetch = 0 : i64, scratch_operands = 1 : i64, tpu.core_type = #tpu.core_type<tc>, window_params = [{transform_indices = @transform_0, window_bounds = array<i64: 1, 4, 384>}, {pipeline_mode = #tpu.pipeline_mode<synchronous>, transform_indices = @transform_1, window_bounds = array<i64: 1, 256>}, {pipeline_mode = #tpu.pipeline_mode<synchronous>, transform_indices = @transform_2, window_bounds = array<i64: 1, 256>}, {pipeline_mode = #tpu.pipeline_mode<synchronous>, transform_indices = @transform_3, window_bounds = array<i64: 32, 48>}, {pipeline_mode = #tpu.pipeline_mode<synchronous>, transform_indices = @transform_4, window_bounds = array<i64: 32, 32>}, {pipeline_mode = #tpu.pipeline_mode<synchronous>, transform_indices = @transform_5, window_bounds = array<i64: 32, 1>}, {pipeline_mode = #tpu.pipeline_mode<synchronous>, transform_indices = @transform_6, window_bounds = array<i64: 8, 32>}, {pipeline_mode = #tpu.pipeline_mode<synchronous>, transform_indices = @transform_7, window_bounds = array<i64: 8, 1>}, {transform_indices = @transform_8, window_bounds = array<i64: 1, 8, 256>}]} {
    %c0 = arith.constant 0 : index
    %c0_0 = arith.constant 0 : index
    %c0_1 = arith.constant 0 : index
    %0 = vector.load %arg1[%c0, %c0_0, %c0_1] : memref<1x4x384xbf16, #tpu.memory_space<vmem>>, vector<1x4x384xbf16>
    %1 = vector.shape_cast %0 : vector<1x4x384xbf16> to vector<4x384xbf16>
    %2 = arith.extf %1 : vector<4x384xbf16> to vector<4x384xf32>
    %c0_2 = arith.constant 0 : index
    %c0_3 = arith.constant 0 : index
    %3 = vector.load %arg2[%c0_2, %c0_3] : memref<1x256xf32, #tpu.memory_space<vmem>>, vector<1x256xf32>
    %c0_4 = arith.constant 0 : index
    %c0_5 = arith.constant 0 : index
    %4 = vector.load %arg3[%c0_4, %c0_5] : memref<1x256xf32, #tpu.memory_space<vmem>>, vector<1x256xf32>
    %5 = tpu.iota {dimensions = array<i32: 0>} : vector<48x256xi32>
    %c36_i32 = arith.constant 36 : i32
    %6 = vector.broadcast %c36_i32 : i32 to vector<48x256xi32>
    %7 = arith.cmpi eq, %5, %6 : vector<48x256xi32>
    %cst = arith.constant 1.000000e+00 : f32
    %cst_6 = arith.constant 0.000000e+00 : f32
    %8 = vector.broadcast %cst : f32 to vector<48x256xf32>
    %9 = vector.broadcast %cst_6 : f32 to vector<48x256xf32>
    %10 = arith.select %7, %8, %9 : vector<48x256xi1>, vector<48x256xf32>
    %c0_7 = arith.constant 0 : index
    %c0_8 = arith.constant 0 : index
    %11 = vector.load %arg10[%c0_7, %c0_8] : memref<48x256xf32, #tpu.memory_space<vmem>>, vector<48x256xf32>
    tpu.vector_store %arg10[%c0_7, %c0_8], %10 {strides = array<i32>} : memref<48x256xf32, #tpu.memory_space<vmem>>, vector<48x256xf32>,
    %12 = vector.extract_strided_slice %2 {offsets = [0, 0], sizes = [4, 256], strides = [1, 1]} : vector<4x384xf32> to vector<4x256xf32>
    %13 = vector.broadcast %3 : vector<1x256xf32> to vector<4x256xf32>
    %14 = arith.mulf %12, %13 : vector<4x256xf32>
    %c0_9 = arith.constant 0 : index
    %c0_10 = arith.constant 0 : index
    %15 = vector.load %arg10[%c0_9, %c0_10] : memref<48x256xf32, #tpu.memory_space<vmem>>, vector<4x256xf32>
    tpu.vector_store %arg10[%c0_9, %c0_10], %14 {strides = array<i32>} : memref<48x256xf32, #tpu.memory_space<vmem>>, vector<4x256xf32>,
    %c383_i32 = arith.constant 383 : i32
    %16 = tpu.dynamic_rotate %2 by %c383_i32 dim 1 : vector<4x384xf32>, i32 -> vector<4x384xf32>
    %17 = vector.extract_strided_slice %16 {offsets = [0, 0], sizes = [4, 256], strides = [1, 1]} : vector<4x384xf32> to vector<4x256xf32>
    %c4 = arith.constant 4 : index
    %c0_11 = arith.constant 0 : index
    %18 = vector.load %arg10[%c4, %c0_11] : memref<48x256xf32, #tpu.memory_space<vmem>>, vector<4x256xf32>
    tpu.vector_store %arg10[%c4, %c0_11], %17 {strides = array<i32>} : memref<48x256xf32, #tpu.memory_space<vmem>>, vector<4x256xf32>,
    %c382_i32 = arith.constant 382 : i32
    %19 = tpu.dynamic_rotate %2 by %c382_i32 dim 1 : vector<4x384xf32>, i32 -> vector<4x384xf32>
    %20 = vector.extract_strided_slice %19 {offsets = [0, 0], sizes = [4, 256], strides = [1, 1]} : vector<4x384xf32> to vector<4x256xf32>
    %21 = vector.broadcast %4 : vector<1x256xf32> to vector<4x256xf32>
    %22 = arith.mulf %20, %21 : vector<4x256xf32>
    %c8 = arith.constant 8 : index
    %c0_12 = arith.constant 0 : index
    %23 = vector.load %arg10[%c8, %c0_12] : memref<48x256xf32, #tpu.memory_space<vmem>>, vector<4x256xf32>
    tpu.vector_store %arg10[%c8, %c0_12], %22 {strides = array<i32>} : memref<48x256xf32, #tpu.memory_space<vmem>>, vector<4x256xf32>,
    %c368_i32 = arith.constant 368 : i32
    %24 = tpu.dynamic_rotate %2 by %c368_i32 dim 1 : vector<4x384xf32>, i32 -> vector<4x384xf32>
    %25 = vector.extract_strided_slice %24 {offsets = [0, 0], sizes = [4, 256], strides = [1, 1]} : vector<4x384xf32> to vector<4x256xf32>
    %26 = vector.broadcast %3 : vector<1x256xf32> to vector<4x256xf32>
    %27 = arith.mulf %25, %26 : vector<4x256xf32>
    %c12 = arith.constant 12 : index
    %c0_13 = arith.constant 0 : index
    %28 = vector.load %arg10[%c12, %c0_13] : memref<48x256xf32, #tpu.memory_space<vmem>>, vector<4x256xf32>
    tpu.vector_store %arg10[%c12, %c0_13], %27 {strides = array<i32>} : memref<48x256xf32, #tpu.memory_space<vmem>>, vector<4x256xf32>,
    %c367_i32 = arith.constant 367 : i32
    %29 = tpu.dynamic_rotate %2 by %c367_i32 dim 1 : vector<4x384xf32>, i32 -> vector<4x384xf32>
    %30 = vector.extract_strided_slice %29 {offsets = [0, 0], sizes = [4, 256], strides = [1, 1]} : vector<4x384xf32> to vector<4x256xf32>
    %c16 = arith.constant 16 : index
    %c0_14 = arith.constant 0 : index
    %31 = vector.load %arg10[%c16, %c0_14] : memref<48x256xf32, #tpu.memory_space<vmem>>, vector<4x256xf32>
    tpu.vector_store %arg10[%c16, %c0_14], %30 {strides = array<i32>} : memref<48x256xf32, #tpu.memory_space<vmem>>, vector<4x256xf32>,
    %c366_i32 = arith.constant 366 : i32
    %32 = tpu.dynamic_rotate %2 by %c366_i32 dim 1 : vector<4x384xf32>, i32 -> vector<4x384xf32>
    %33 = vector.extract_strided_slice %32 {offsets = [0, 0], sizes = [4, 256], strides = [1, 1]} : vector<4x384xf32> to vector<4x256xf32>
    %34 = vector.broadcast %4 : vector<1x256xf32> to vector<4x256xf32>
    %35 = arith.mulf %33, %34 : vector<4x256xf32>
    %c20 = arith.constant 20 : index
    %c0_15 = arith.constant 0 : index
    %36 = vector.load %arg10[%c20, %c0_15] : memref<48x256xf32, #tpu.memory_space<vmem>>, vector<4x256xf32>
    tpu.vector_store %arg10[%c20, %c0_15], %35 {strides = array<i32>} : memref<48x256xf32, #tpu.memory_space<vmem>>, vector<4x256xf32>,
    %c352_i32 = arith.constant 352 : i32
    %37 = tpu.dynamic_rotate %2 by %c352_i32 dim 1 : vector<4x384xf32>, i32 -> vector<4x384xf32>
    %38 = vector.extract_strided_slice %37 {offsets = [0, 0], sizes = [4, 256], strides = [1, 1]} : vector<4x384xf32> to vector<4x256xf32>
    %39 = vector.broadcast %3 : vector<1x256xf32> to vector<4x256xf32>
    %40 = arith.mulf %38, %39 : vector<4x256xf32>
    %c24 = arith.constant 24 : index
    %c0_16 = arith.constant 0 : index
    %41 = vector.load %arg10[%c24, %c0_16] : memref<48x256xf32, #tpu.memory_space<vmem>>, vector<4x256xf32>
    tpu.vector_store %arg10[%c24, %c0_16], %40 {strides = array<i32>} : memref<48x256xf32, #tpu.memory_space<vmem>>, vector<4x256xf32>,
    %c351_i32 = arith.constant 351 : i32
    %42 = tpu.dynamic_rotate %2 by %c351_i32 dim 1 : vector<4x384xf32>, i32 -> vector<4x384xf32>
    %43 = vector.extract_strided_slice %42 {offsets = [0, 0], sizes = [4, 256], strides = [1, 1]} : vector<4x384xf32> to vector<4x256xf32>
    %c28 = arith.constant 28 : index
    %c0_17 = arith.constant 0 : index
    %44 = vector.load %arg10[%c28, %c0_17] : memref<48x256xf32, #tpu.memory_space<vmem>>, vector<4x256xf32>
    tpu.vector_store %arg10[%c28, %c0_17], %43 {strides = array<i32>} : memref<48x256xf32, #tpu.memory_space<vmem>>, vector<4x256xf32>,
    %c350_i32 = arith.constant 350 : i32
    %45 = tpu.dynamic_rotate %2 by %c350_i32 dim 1 : vector<4x384xf32>, i32 -> vector<4x384xf32>
    %46 = vector.extract_strided_slice %45 {offsets = [0, 0], sizes = [4, 256], strides = [1, 1]} : vector<4x384xf32> to vector<4x256xf32>
    %47 = vector.broadcast %4 : vector<1x256xf32> to vector<4x256xf32>
    %48 = arith.mulf %46, %47 : vector<4x256xf32>
    %c32 = arith.constant 32 : index
    %c0_18 = arith.constant 0 : index
    %49 = vector.load %arg10[%c32, %c0_18] : memref<48x256xf32, #tpu.memory_space<vmem>>, vector<4x256xf32>
    tpu.vector_store %arg10[%c32, %c0_18], %48 {strides = array<i32>} : memref<48x256xf32, #tpu.memory_space<vmem>>, vector<4x256xf32>,
    %c0_19 = arith.constant 0 : index
    %c0_20 = arith.constant 0 : index
    %50 = vector.load %arg10[%c0_19, %c0_20] : memref<48x256xf32, #tpu.memory_space<vmem>>, vector<48x256xf32>
    %51 = arith.truncf %50 : vector<48x256xf32> to vector<48x256xbf16>
    %c0_21 = arith.constant 0 : index
    %c0_22 = arith.constant 0 : index
    %52 = vector.load %arg4[%c0_21, %c0_22] : memref<32x48xbf16, #tpu.memory_space<vmem>>, vector<32x48xbf16>
    %cst_23 = arith.constant dense<0.000000e+00> : vector<32x256xf32>
    %53 = tpu.matmul %52, %51, %cst_23 {dimension_numbers = #tpu.dot_dimension_numbers<[1], [0], [0], [1], [0, 0, 1, 1], [], []>} : vector<32x48xbf16>, vector<48x256xbf16>, vector<32x256xf32> -> vector<32x256xf32>
    %cst_24 = arith.constant 0.000000e+00 : f32
    %54 = vector.broadcast %cst_24 : f32 to vector<32x256xf32>
    %55 = arith.maximumf %53, %54 : vector<32x256xf32>
    %c0_25 = arith.constant 0 : index
    %c0_26 = arith.constant 0 : index
    %56 = vector.load %arg5[%c0_25, %c0_26] : memref<32x32xbf16, #tpu.memory_space<vmem>>, vector<32x32xbf16>
    %57 = arith.truncf %55 : vector<32x256xf32> to vector<32x256xbf16>
    %cst_27 = arith.constant dense<0.000000e+00> : vector<32x256xf32>
    %58 = tpu.matmul %56, %57, %cst_27 {dimension_numbers = #tpu.dot_dimension_numbers<[1], [0], [0], [1], [0, 0, 1, 1], [], []>} : vector<32x32xbf16>, vector<32x256xbf16>, vector<32x256xf32> -> vector<32x256xf32>
    %c0_28 = arith.constant 0 : index
    %c0_29 = arith.constant 0 : index
    %59 = vector.load %arg6[%c0_28, %c0_29] : memref<32x1xf32, #tpu.memory_space<vmem>>, vector<32x1xf32>
    %60 = vector.broadcast %59 : vector<32x1xf32> to vector<32x256xf32>
    %61 = arith.addf %58, %60 : vector<32x256xf32>
    %cst_30 = arith.constant 0.000000e+00 : f32
    %62 = vector.broadcast %cst_30 : f32 to vector<32x256xf32>
    %63 = arith.maximumf %61, %62 : vector<32x256xf32>
    %c0_31 = arith.constant 0 : index
    %c0_32 = arith.constant 0 : index
    %64 = vector.load %arg7[%c0_31, %c0_32] : memref<8x32xbf16, #tpu.memory_space<vmem>>, vector<8x32xbf16>
    %65 = arith.truncf %63 : vector<32x256xf32> to vector<32x256xbf16>
    %cst_33 = arith.constant dense<0.000000e+00> : vector<8x256xf32>
    %66 = tpu.matmul %64, %65, %cst_33 {dimension_numbers = #tpu.dot_dimension_numbers<[1], [0], [0], [1], [0, 0, 1, 1], [], []>} : vector<8x32xbf16>, vector<32x256xbf16>, vector<8x256xf32> -> vector<8x256xf32>
    %c0_34 = arith.constant 0 : index
    %c0_35 = arith.constant 0 : index
    %67 = vector.load %arg8[%c0_34, %c0_35] : memref<8x1xf32, #tpu.memory_space<vmem>>, vector<8x1xf32>
    %68 = vector.broadcast %67 : vector<8x1xf32> to vector<8x256xf32>
    %69 = arith.addf %66, %68 : vector<8x256xf32>
    %c0_36 = arith.constant 0 : index
    %c0_37 = arith.constant 0 : index
    %c0_38 = arith.constant 0 : index
    %70 = vector.load %arg9[%c0_36, %c0_37, %c0_38] : memref<1x8x256xf32, #tpu.memory_space<vmem>>, vector<1x8x256xf32>
    %71 = vector.shape_cast %70 : vector<1x8x256xf32> to vector<8x256xf32>
    %72 = vector.shape_cast %69 : vector<8x256xf32> to vector<1x8x256xf32>
    tpu.vector_store %arg9[%c0_36, %c0_37, %c0_38], %72 {strides = array<i32>} : memref<1x8x256xf32, #tpu.memory_space<vmem>>, vector<1x8x256xf32>,
    return
  }
  func.func @transform_0(%arg0: i32) -> (i32, i32, i32) {
    %c0_i32 = arith.constant 0 : i32
    %c0_i32_0 = arith.constant 0 : i32
    %c0_i32_1 = arith.constant 0 : i32
    return %arg0, %c0_i32, %c0_i32_0 : i32, i32, i32
  }
  func.func @transform_1(%arg0: i32) -> (i32, i32) {
    %c0_i32 = arith.constant 0 : i32
    %c0_i32_0 = arith.constant 0 : i32
    %c0_i32_1 = arith.constant 0 : i32
    return %c0_i32, %c0_i32_0 : i32, i32
  }
  func.func @transform_2(%arg0: i32) -> (i32, i32) {
    %c0_i32 = arith.constant 0 : i32
    %c0_i32_0 = arith.constant 0 : i32
    %c0_i32_1 = arith.constant 0 : i32
    return %c0_i32, %c0_i32_0 : i32, i32
  }
  func.func @transform_3(%arg0: i32) -> (i32, i32) {
    %c0_i32 = arith.constant 0 : i32
    %c0_i32_0 = arith.constant 0 : i32
    %c0_i32_1 = arith.constant 0 : i32
    return %c0_i32, %c0_i32_0 : i32, i32
  }
  func.func @transform_4(%arg0: i32) -> (i32, i32) {
    %c0_i32 = arith.constant 0 : i32
    %c0_i32_0 = arith.constant 0 : i32
    %c0_i32_1 = arith.constant 0 : i32
    return %c0_i32, %c0_i32_0 : i32, i32
  }
  func.func @transform_5(%arg0: i32) -> (i32, i32) {
    %c0_i32 = arith.constant 0 : i32
    %c0_i32_0 = arith.constant 0 : i32
    %c0_i32_1 = arith.constant 0 : i32
    return %c0_i32, %c0_i32_0 : i32, i32
  }
  func.func @transform_6(%arg0: i32) -> (i32, i32) {
    %c0_i32 = arith.constant 0 : i32
    %c0_i32_0 = arith.constant 0 : i32
    %c0_i32_1 = arith.constant 0 : i32
    return %c0_i32, %c0_i32_0 : i32, i32
  }
  func.func @transform_7(%arg0: i32) -> (i32, i32) {
    %c0_i32 = arith.constant 0 : i32
    %c0_i32_0 = arith.constant 0 : i32
    %c0_i32_1 = arith.constant 0 : i32
    return %c0_i32, %c0_i32_0 : i32, i32
  }
  func.func @transform_8(%arg0: i32) -> (i32, i32, i32) {
    %c0_i32 = arith.constant 0 : i32
    %c0_i32_0 = arith.constant 0 : i32
    %c0_i32_1 = arith.constant 0 : i32
    return %arg0, %c0_i32, %c0_i32_0 : i32, i32, i32
  }
}

</mosaic_0001>

<bundles_post_ra>
// kernel: segmentation_model_forward.1
= control target key start
LH: loop header
LB: loop body
LE: loop exit
PB: predicated region body
PF: predicated region fallthrough
CT: control target
= control target key end

     0   :  { %s970_s27 = smov 0   ;;  %s1109_s0 = inlined_call_operand.vmem [shape: bf16[2,4,384], index: 0, kind: input, shape index: {}]   ;;  %s1110_s1 = inlined_call_operand.vmem [shape: f32[1,256], index: 1, kind: input, shape index: {}]   ;;  %s1111_s2 = inlined_call_operand.vmem [shape: f32[1,256], index: 2, kind: input, shape index: {}]   ;;  %s1112_s3 = inlined_call_operand.vmem [shape: bf16[32,48], index: 3, kind: input, shape index: {}]   ;;  %s1113_s4 = inlined_call_operand.vmem [shape: bf16[32,32], index: 4, kind: input, shape index: {}]   ;;  %s1114_s5 = inlined_call_operand.vmem [shape: f32[32,1], index: 5, kind: input, shape index: {}]   ;;  %s1115_s6 = inlined_call_operand.vmem [shape: bf16[8,32], index: 6, kind: input, shape index: {}]   ;;  %s1116_s7 = inlined_call_operand.vmem [shape: f32[8,1], index: 7, kind: input, shape index: {}]   ;;  %s1117_s8 = inlined_call_operand.vmem [shape: f32[2,8,256], index: 8, kind: output, shape index: {}]  }
   0x1 LB: > { %s822_s28 = sadd.s32 4294967295, %s913_s27   ;;  %p826_p0 = scmp.ge.s32.totalorder %s913_s27, 1  ;;  %s913_s27 = sphi %s970_s27, %s18_s27  }
   0x2   : > { %p262_p1 = scmp.lt.s32.totalorder %s913_s27, 3 }
   0x4   : > { %p263_p2 = pnand %p826_p0, %p262_p1 }
   0x5   : > { %p296_p3 = scmp.lt.s32.totalorder (!%p263_p2), %s822_s28, 1  ;;  %v312_v0 = vlaneseq (!%p263_p2)  ;;  %v915_v1 = vmov (!%p263_p2), 0.0   ;;  %v310_v3 = vld [vmem:[%s1110_s1] sm:$0x3] (!%p263_p2)  ;;  %s916_s13 = smov (!%p263_p2), 126   ;;  %v924_v18 = vmov (!%p263_p2), 0  }
   0x6   : > { %266 = sbr.rel (%p263_p2) target bundleno = 862 (0x35e), region = 52  ;;  %331 = vst [vmem:[#allocation2] sm:$0xff] (!%p263_p2), %v915_v1  ;;  %332 = vst [vmem:[#allocation2 + $0x8] sm:$0xff] (!%p263_p2), %v915_v1  ;;  %s917_s14 = smov (!%p263_p2), 112   ;;  %571 = vmatprep.mubr.bf16.mxu0 (!%p263_p2), %v924_v18  ;;  %681 = vmatprep.mubr.bf16.mxu1 (!%p263_p2), %v924_v18  ;;  %v311_v24 = vld [vmem:[%s1111_s2] sm:$0x3] (!%p263_p2) }
   0x7   : > { %333 = vst [vmem:[#allocation2 + $0x10] sm:$0xff] (!%p263_p2), %v915_v1  ;;  %334 = vst [vmem:[#allocation2 + $0x18] sm:$0xff] (!%p263_p2), %v915_v1  ;;  %v989_v2 = vshrl.u32 (!%p263_p2), %v312_v0, 7  ;;  %s918_s15 = smov (!%p263_p2), 110   ;;  %s919_s16 = smov (!%p263_p2), 127   ;;  %902 = vset.pattern.permute.xlu1 (!%p263_p2), %v924_v18  ;;  %901 = vset.pattern.permute.xlu0 (!%p263_p2), %v924_v18  ;;  %v1017_v23 = vand.u32 (!%p263_p2), 127, %v312_v0 }
   0x8   : > { %335 = vst [vmem:[#allocation2 + $0x20] sm:$0xff] (!%p263_p2), %v915_v1  ;;  %336 = vst [vmem:[#allocation2 + $0x28] sm:$0xff] (!%p263_p2), %v915_v1  ;;  %s920_s17 = smov (!%p263_p2), 95   ;;  %s921_s18 = smov (!%p263_p2), 96   ;;  %vm532_vm9 = vcmask (!%p263_p2), 392192   ;;  %vm642_vm10 = vcmask (!%p263_p2), 261120  }
   0x9   : > { %337 = vst [vmem:[#allocation2 + $0x30] sm:$0xff] (!%p263_p2), %v915_v1  ;;  %338 = vst [vmem:[#allocation2 + $0x38] sm:$0xff] (!%p263_p2), %v915_v1  ;;  %v346_v4 = vsub.s32 (!%p263_p2), 0, %v989_v2  ;;  %v350_v5 = vsub.s32 (!%p263_p2), 1, %v989_v2  ;;  %v317_v16 = vadd.s32 (!%p263_p2), 32, %v989_v2  ;;  %s922_s19 = smov (!%p263_p2), 111  }
   0xa   : > { %s923_s20 = smov (!%p263_p2), 94   ;;  %vm373_vm1 = vcmp.lt.s32.totalorder (!%p263_p2), %v1017_v23, 127  ;;  %vm414_vm2 = vcmp.lt.s32.totalorder (!%p263_p2), %v1017_v23, 112  ;;  %vm390_vm3 = vcmp.lt.s32.totalorder (!%p263_p2), %v1017_v23, 126  ;;  %vm444_vm4 = vcmp.lt.s32.totalorder (!%p263_p2), %v1017_v23, 110 }
   0xb   : > { %v1002_v6 = vrot.slane (!%p263_p2), %v310_v3, %v346_v4  ;;  %v1006_v7 = vrot.slane (!%p263_p2), %v310_v3, %v350_v5  ;;  %vm323_vm0 = vcmp.eq.s32.totalorder (!%p263_p2), %v317_v16, 36  ;;  %v1027_v31 = vrot.slane (!%p263_p2), %v311_v24, %v346_v4 }
   0xc   : > { %v329_v17 = vsel (!%p263_p2), %vm323_vm0, 1.0, %v915_v1  ;;  %v1031_v32 = vrot.slane (!%p263_p2), %v311_v24, %v350_v5  ;;  %vm476_vm5 = vcmp.lt.s32.totalorder (!%p263_p2), %v1017_v23, 95  ;;  %vm463_vm6 = vcmp.lt.s32.totalorder (!%p263_p2), %v1017_v23, 96 }
   0xd   : > { %s1119_s28 = smov (!%p296_p3, %s822_s28), 1  ;;  %v354_v10 = vcombine.low %v1002_v6, %v1006_v7  ;;  %339 = vst [vmem:[#allocation2 + $0x40] sm:$0xff] %v329_v17  ;;  %340 = vst [vmem:[#allocation2 + $0x48] sm:$0xff] %v329_v17  ;;  %vm433_vm7 = vcmp.lt.s32.totalorder %v1017_v23, 111  ;;  %vm493_vm8 = vcmp.lt.s32.totalorder %v1017_v23, 94 }
   0xe   : > { %s842_s9 = smul.u32 6, %s1119_s28  ;;  %s841_s23 = sshll.u32 %s1119_s28, 4 }
   0xf   : > { %s305_s26 = scalar_lea.vmem %s1117_s8, %s841_s23 }
  0x10   : > { %s300_s12 = scalar_lea.vmem %s1109_s0, %s842_s9 }
  0x11   : > { %v307_v8 = vld [vmem:[%s300_s12] sm:$0x3f] }
  0x12   : > { %v308_v9 = vunpack.c.l.bf16 %v307_v8  ;;  %v309_v11 = vunpack.c.h.bf16 %v307_v8 }
  0x14   : > { %384 = vrot.lane.b32.xlu1 %v308_v9, %s916_s13  ;;  %408 = vrot.lane.b32.xlu0 %v308_v9, %s917_s14  ;;  %v363_v12 = vcombine.high %v308_v9, %v308_v9  ;;  %v356_v13 = vmul.f32 %v354_v10, %v308_v9 }
  0x16   : > { %360 = vst [vmem:[#allocation2] sm:$0xf] %v356_v13  ;;  %v866_v14 = vpack.i.bf16 %v309_v11, %v363_v12  ;;  %v358_v15 = vcombine.high %v356_v13, %v356_v13 }
  0x18   : > { %438 = vrot.lane.b32.xlu1 %v308_v9, %s918_s15  ;;  %365 = vrot.lane.b32.xlu0 %v308_v9, %s919_s16  ;;  %361 = vst [vmem:[#allocation2 + $0x8] sm:$0xf] %v358_v15 }
  0x1c   : > { %867 = vrot.lane.b32.xlu1 %v866_v14, %s919_s16  ;;  %862 = vrot.lane.b32.xlu0 %v866_v14, %s917_s14 }
  0x20   : > { %872 = vrot.lane.b32.xlu1 %v866_v14, %s916_s13  ;;  %877 = vrot.lane.b32.xlu0 %v866_v14, %s918_s15 }
  0x24   : > { %887 = vrot.lane.b32.xlu1 %v866_v14, %s920_s17  ;;  %882 = vrot.lane.b32.xlu0 %v866_v14, %s921_s18 }
  0x28   : > { %470 = vrot.lane.b32.xlu1 %v308_v9, %s920_s17  ;;  %457 = vrot.lane.b32.xlu0 %v308_v9, %s921_s18 }
  0x2c   : > { %892 = vrot.lane.b32.xlu0 %v866_v14, %s922_s19  ;;  %427 = vrot.lane.b32.xlu1 %v308_v9, %s922_s19 }
  0x30   : > { %897 = vrot.lane.b32.xlu0 %v866_v14, %s923_s20  ;;  %487 = vrot.lane.b32.xlu1 %v308_v9, %s923_s20 }
  0x86   : > { %v385_v19 = vpop.permute.xlu1 %384  ;;  %v409_v20 = vpop.permute.xlu0 %408 }
  0x8a   : > { %v439_v21 = vpop.permute.xlu1 %438  ;;  %v366_v22 = vpop.permute.xlu0 %365 }
  0x8e   : > { %v868_v25 = vpop.permute.xlu1 %867  ;;  %v863_v26 = vpop.permute.xlu0 %862 }
  0x8f   : > { %v870_v27 = vunpack.i.h.bf16 %v868_v25  ;;  %v869_v28 = vunpack.i.l.bf16 %v868_v25  ;;  %v865_v29 = vunpack.i.h.bf16 %v863_v26  ;;  %v864_v30 = vunpack.i.l.bf16 %v863_v26 }
  0x91   : > { %v374_v33 = vsel %vm373_vm1, %v869_v28, %v870_v27  ;;  %v375_v34 = vsel %vm373_vm1, %v366_v22, %v869_v28  ;;  %v415_v35 = vsel %vm414_vm2, %v864_v30, %v865_v29  ;;  %v416_v36 = vsel %vm414_vm2, %v409_v20, %v864_v30 }
  0x92   : > { %v378_v37 = vrot.slane %v375_v34, 4  ;;  %v379_v38 = vrot.slane %v374_v33, 4  ;;  %v417_v39 = vmul.f32 %v416_v36, %v1002_v6  ;;  %v418_v40 = vmul.f32 %v415_v35, %v1006_v7  ;;  %v873_v41 = vpop.permute.xlu1 %872  ;;  %v878_v42 = vpop.permute.xlu0 %877 }
  0x93   : > { %v875_v43 = vunpack.i.h.bf16 %v873_v41  ;;  %v874_v44 = vunpack.i.l.bf16 %v873_v41  ;;  %v880_v45 = vunpack.i.h.bf16 %v878_v42  ;;  %v879_v46 = vunpack.i.l.bf16 %v878_v42 }
  0x94   : > { %382 = vst [vmem:[#allocation2] sm:$0xf0] %v378_v37  ;;  %383 = vst [vmem:[#allocation2 + $0x8] sm:$0xf0] %v379_v38  ;;  %v421_v47 = vrot.slane %v417_v39, 4  ;;  %v422_v48 = vrot.slane %v418_v40, 4 }
  0x95   : > { %v391_v49 = vsel %vm390_vm3, %v874_v44, %v875_v43  ;;  %v392_v50 = vsel %vm390_vm3, %v385_v19, %v874_v44  ;;  %v445_v51 = vsel %vm444_vm4, %v879_v46, %v880_v45  ;;  %v446_v52 = vsel %vm444_vm4, %v439_v21, %v879_v46  ;;  %v609_v45 = vld [vmem:[%s1114_s5 + $0x8] sm:$0xff]  ;;  %v610_v46 = vld [vmem:[%s1114_s5 + $0x10] sm:$0xff] }
  0x96   : > { %425 = vst [vmem:[#allocation2 + $0x10] sm:$0xf0] %v421_v47  ;;  %426 = vst [vmem:[#allocation2 + $0x18] sm:$0xf0] %v422_v48  ;;  %v404_v53 = vmul.f32 %v1027_v31, %v392_v50  ;;  %v405_v54 = vmul.f32 %v1031_v32, %v391_v49  ;;  %v448_v55 = vmul.f32 %v445_v51, %v1031_v32  ;;  %v888_v56 = vpop.permute.xlu1 %887  ;;  %v883_v57 = vpop.permute.xlu0 %882  ;;  %619 = vperm.xlu1 %902, %v609_v45   ;;  %v611_v47 = vld [vmem:[%s1114_s5 + $0x18] sm:$0xff]  ;;  %v715_v48 = vld [vmem:[%s1116_s7] sm:$0xff] }
  0x97   : > { %v447_v58 = vmul.f32 %v446_v52, %v1027_v31  ;;  %v890_v59 = vunpack.i.h.bf16 %v888_v56  ;;  %v889_v60 = vunpack.i.l.bf16 %v888_v56  ;;  %v885_v61 = vunpack.i.h.bf16 %v883_v57 }
  0x98   : > { %v884_v62 = vunpack.i.l.bf16 %v883_v57  ;;  %406 = vst [vmem:[#allocation2 + $0x10] sm:$0xf] %v404_v53  ;;  %407 = vst [vmem:[#allocation2 + $0x18] sm:$0xf] %v405_v54  ;;  %v452_v63 = vrot.slane %v448_v55, 4 }
  0x99   : > { %v451_v0 = vrot.slane %v447_v58, 4  ;;  %v477_v2 = vsel %vm476_vm5, %v889_v60, %v890_v59 }
  0x9a   : > { %v464_v3 = vsel %vm463_vm6, %v884_v62, %v885_v61  ;;  %456 = vst [vmem:[#allocation2 + $0x28] sm:$0xf0] %v452_v63  ;;  %v471_v4 = vpop.permute.xlu1 %470  ;;  %v482_v5 = vrot.slane %v477_v2, 4  ;;  %v458_v8 = vpop.permute.xlu0 %457  ;;  %624 = vperm.xlu1 %902, %v610_v46  }
  0x9b   : > { %v467_v9 = vmul.f32 %v464_v3, %v1006_v7  ;;  %455 = vst [vmem:[#allocation2 + $0x20] sm:$0xf0] %v451_v0  ;;  %v478_v10 = vsel %vm476_vm5, %v471_v4, %v889_v60  ;;  %v465_v11 = vsel %vm463_vm6, %v458_v8, %v884_v62  ;;  %v501_v14 = vld [vmem:[#allocation2 + $0x8] sm:$0xff]  ;;  %v500_v20 = vld [vmem:[#allocation2] sm:$0xff] }
  0x9c   : > { %v481_v12 = vrot.slane %v478_v10, 4  ;;  %486 = vst [vmem:[#allocation2 + $0x38] sm:$0xf0] %v482_v5  ;;  %v466_v13 = vmul.f32 %v465_v11, %v1002_v6  ;;  %v905_v8 = vld [vmem:[%s1113_s4] sm:$0xff]  }
  0x9d   : > { %469 = vst [vmem:[#allocation2 + $0x38] sm:$0xf] %v467_v9  ;;  %v906_v9 = vld [vmem:[%s1113_s4 + $0x8] sm:$0xff]  }
  0x9e   : > { %485 = vst [vmem:[#allocation2 + $0x30] sm:$0xf0] %v481_v12  ;;  %468 = vst [vmem:[#allocation2 + $0x30] sm:$0xf] %v466_v13  ;;  %v893_v15 = vpop.permute.xlu0 %892  ;;  %v428_v16 = vpop.permute.xlu1 %427  ;;  %718 = vperm.xlu1 %902, %v715_v48  }
  0x9f   : > { %v895_v7 = vunpack.i.h.bf16 %v893_v15  ;;  %v894_v17 = vunpack.i.l.bf16 %v893_v15  ;;  %v503_v19 = vld [vmem:[#allocation2 + $0x18] sm:$0xff]  ;;  %v502_v21 = vld [vmem:[#allocation2 + $0x10] sm:$0xff] }
  0xa0   : > { %v513_v22 = vpack.c.bf16 %v503_v19, %v501_v14  ;;  %v512_v24 = vpack.c.bf16 %v502_v21, %v500_v20 }
  0xa1   : > { %v434_v25 = vsel %vm433_vm7, %v894_v17, %v895_v7  ;;  %v435_v26 = vsel %vm433_vm7, %v428_v16, %v894_v17 }
  0xa2   : > { %436 = vst [vmem:[#allocation2 + $0x20] sm:$0xf] %v435_v26  ;;  %437 = vst [vmem:[#allocation2 + $0x28] sm:$0xf] %v434_v25  ;;  %v898_v6 = vpop.permute.xlu0 %897  ;;  %539 = vmatprep.subr.bf16.mxu0 %v513_v22  ;;  %v488_v27 = vpop.permute.xlu1 %487 }
  0xa3   : > { %v900_v28 = vunpack.i.h.bf16 %v898_v6  ;;  %v899_v29 = vunpack.i.l.bf16 %v898_v6  ;;  %540 = vmatpush1.bf16.msra.mxu0 %v512_v24 }
  0xa4   : > { %v507_v36 = vld [vmem:[#allocation2 + $0x38] sm:$0xff] }
  0xa5   : > { %v494_v30 = vsel %vm493_vm8, %v899_v29, %v900_v28  ;;  %v495_v33 = vsel %vm493_vm8, %v488_v27, %v899_v29  ;;  %v506_v39 = vld [vmem:[#allocation2 + $0x30] sm:$0xff] }
  0xa6   : > { %v496_v34 = vmul.f32 %v495_v33, %v1027_v31  ;;  %v497_v35 = vmul.f32 %v494_v30, %v1031_v32  ;;  %v903_v31 = vld [vmem:[%s1112_s3] sm:$0xff]   ;;  %v904_v32 = vld [vmem:[%s1112_s3 + $0x8] sm:$0xff]  }
  0xa8   : > { %498 = vst [vmem:[#allocation2 + $0x40] sm:$0xf] %v496_v34  ;;  %499 = vst [vmem:[#allocation2 + $0x48] sm:$0xf] %v497_v35 }
  0xa9   : > { %v505_v37 = vld [vmem:[#allocation2 + $0x28] sm:$0xff]  ;;  %v504_v38 = vld [vmem:[#allocation2 + $0x20] sm:$0xff] }
  0xaa   : > { %v515_v40 = vpack.c.bf16 %v507_v36, %v505_v37  ;;  %v514_v41 = vpack.c.bf16 %v506_v39, %v504_v38 }
  0xac   : > { %541 = vmatprep.subr.bf16.mxu0 %v515_v40 }
  0xad   : > { %542 = vmatpush1.bf16.msra.mxu0 %v514_v41 }
  0xaf   : > { %v509_v23 = vld [vmem:[#allocation2 + $0x48] sm:$0xff]  ;;  %v508_v42 = vld [vmem:[#allocation2 + $0x40] sm:$0xff] }
  0xb0   : > { %v517_v43 = vpack.c.bf16 %v915_v1, %v509_v23  ;;  %v516_v44 = vpack.c.bf16 %v915_v1, %v508_v42  ;;  %v608_v1 = vld [vmem:[%s1114_s5] sm:$0xff] }
  0xb1   : > { %614 = vperm.xlu0 %901, %v608_v1   ;;  %v710_v42 = vld [vmem:[%s1115_s6] sm:$0xf] }
  0xb2   : > { %543 = vmatprep.subr.bf16.mxu0 %v517_v43 }
  0xb3   : > { %544 = vmatpush1.bf16.msra.mxu0 %v516_v44 }
  0xb5   : > { %629 = vperm.xlu0 %901, %v611_v47  }
  0xb6   : > { %832 = vmatmul.mubr.msk.bf16.vlgmr.msra.gmra.mrb[0].mxu0 %vm532_vm9, %v903_v31 }
  0xb7   : > { %581 = vmatprep.mubr.bf16.mxu0 %v924_v18 }
  0xbe   : > { %833 = vmatmul.mubr.msk.bf16.gmra.mrb[4].mxu0 %vm532_vm9, %v904_v32 }
 0x115   : > { %v620_v14 = vpop.permute.xlu1 %619 }
 0x119   : > { %v625_v26 = vpop.permute.xlu1 %624 }
 0x11d   : > { %v719_v43 = vpop.permute.xlu1 %718 }
 0x130   : > { %v615_v10 = vpop.permute.xlu0 %614 }
 0x134   : > { %v630_v29 = vpop.permute.xlu0 %629 }
 0x189   : > { %v573_v49 = vpop.f32.mrb[0].mxu0 }
 0x18a   : > { %v575_v50 = vpop.f32.mrb[1].mxu0  ;;  %v592_v52 = vmax.f32 %v573_v49, 0.0 }
 0x18b   : > { %v577_v51 = vpop.f32.mrb[2].mxu0  ;;  %v593_v55 = vmax.f32 %v575_v50, 0.0 }
 0x18c   : > { %v594_v53 = vmax.f32 %v577_v51, 0.0  ;;  %v579_v54 = vpop.f32.mrb[3].mxu0 }
 0x18d   : > { %v595_v56 = vmax.f32 %v579_v54, 0.0 }
 0x18e   : > { %v604_v57 = vpack.c.bf16 %v594_v53, %v592_v52 }
 0x18f   : > { %v605_v58 = vpack.c.bf16 %v595_v56, %v593_v55 }
 0x191   : > { %v583_v59 = vpop.f32.mrb[4].mxu0  ;;  %649 = vmatprep.subr.bf16.mxu1 %v605_v58 }
 0x192   : > { %v585_v60 = vpop.f32.mrb[5].mxu0  ;;  %650 = vmatpush1.bf16.msra.mxu1 %v604_v57  ;;  %v596_v62 = vmax.f32 %v583_v59, 0.0 }
 0x193   : > { %v587_v61 = vpop.f32.mrb[6].mxu0  ;;  %v597_v2 = vmax.f32 %v585_v60, 0.0 }
 0x194   : > { %v598_v63 = vmax.f32 %v587_v61, 0.0  ;;  %v589_v0 = vpop.f32.mrb[7].mxu0 }
 0x195   : > { %v599_v3 = vmax.f32 %v589_v0, 0.0 }
 0x196   : > { %v606_v4 = vpack.c.bf16 %v598_v63, %v596_v62 }
 0x197   : > { %v607_v5 = vpack.c.bf16 %v599_v3, %v597_v2 }
 0x199   : > { %651 = vmatprep.subr.bf16.mxu1 %v607_v5 }
 0x19a   : > { %652 = vmatpush1.bf16.msra.mxu1 %v606_v4 }
 0x19d   : > { %836 = vmatmul.mubr.msk.bf16.vlgmr.msra.gmra.mrb[0].mxu1 %vm642_vm10, %v905_v8 }
 0x19e   : > { %691 = vmatprep.mubr.bf16.mxu1 %v924_v18 }
 0x1a5   : > { %837 = vmatmul.mubr.msk.bf16.gmra.mrb[4].mxu1 %vm642_vm10, %v906_v9 }
 0x1a6   : > { %756 = vmatprep.mubr.bf16.mxu1 %v924_v18 }
 0x270   : > { %v683_v11 = vpop.f32.mrb[0].mxu1 }
 0x271   : > { %v684_v12 = vadd.f32 %v683_v11, %v615_v10  ;;  %v685_v13 = vpop.f32.mrb[1].mxu1 }
 0x272   : > { %v686_v15 = vadd.f32 %v685_v13, %v615_v10  ;;  %v687_v16 = vpop.f32.mrb[2].mxu1 }
 0x273   : > { %v688_v7 = vadd.f32 %v687_v16, %v620_v14  ;;  %v689_v17 = vpop.f32.mrb[3].mxu1  ;;  %v702_v20 = vmax.f32 %v684_v12, 0.0 }
 0x274   : > { %v690_v19 = vadd.f32 %v689_v17, %v620_v14  ;;  %v703_v22 = vmax.f32 %v686_v15, 0.0 }
 0x275   : > { %v704_v21 = vmax.f32 %v688_v7, 0.0 }
 0x276   : > { %v705_v24 = vmax.f32 %v690_v19, 0.0 }
 0x277   : > { %v711_v25 = vpack.c.bf16 %v704_v21, %v702_v20 }
 0x278   : > { %v712_v6 = vpack.c.bf16 %v705_v24, %v703_v22  ;;  %v693_v27 = vpop.f32.mrb[4].mxu1 }
 0x279   : > { %v694_v28 = vadd.f32 %v693_v27, %v625_v26  ;;  %v695_v18 = vpop.f32.mrb[5].mxu1 }
 0x27a   : > { %v696_v30 = vadd.f32 %v695_v18, %v625_v26  ;;  %v697_v33 = vpop.f32.mrb[6].mxu1  ;;  %724 = vmatprep.subr.bf16.mxu1 %v712_v6 }
 0x27b   : > { %v698_v34 = vadd.f32 %v697_v33, %v630_v29  ;;  %v699_v35 = vpop.f32.mrb[7].mxu1  ;;  %725 = vmatpush1.bf16.msra.mxu1 %v711_v25  ;;  %v706_v37 = vmax.f32 %v694_v28, 0.0 }
 0x27c   : > { %v700_v36 = vadd.f32 %v699_v35, %v630_v29  ;;  %v707_v39 = vmax.f32 %v696_v30, 0.0 }
 0x27d   : > { %v708_v38 = vmax.f32 %v698_v34, 0.0 }
 0x27e   : > { %v709_v40 = vmax.f32 %v700_v36, 0.0 }
 0x27f   : > { %v713_v41 = vpack.c.bf16 %v708_v38, %v706_v37 }
 0x280   : > { %v714_v23 = vpack.c.bf16 %v709_v40, %v707_v39 }
 0x282   : > { %726 = vmatprep.subr.bf16.mxu1 %v714_v23 }
 0x283   : > { %727 = vmatpush1.bf16.msra.mxu1 %v713_v41 }
 0x286   : > { %838 = vmatmul.mubr.msk.bf16.vlgmr.msra.gmra.mrb[8].mxu1 %vm642_vm10, %v710_v42 }
 0x359   : > { %v758_v44 = vpop.f32.mrb[8].mxu1 }
 0x35a   : > { %v759_v31 = vadd.f32 %v758_v44, %v719_v43  ;;  %v760_v32 = vpop.f32.mrb[9].mxu1 }
 0x35b   : > { %v761_v45 = vadd.f32 %v760_v32, %v719_v43  ;;  %v762_v1 = vpop.f32.mrb[10].mxu1 }
 0x35c   : > { %765 = vst [vmem:[%s305_s26] sm:$0xff] %v759_v31  ;;  %v763_v46 = vpop.f32.mrb[11].mxu1 }
 0x35d   : > { %766 = vst [vmem:[%s305_s26 + $0x8] sm:$0xff] %v761_v45 }
 0x35e PF: > { %s18_s27 = sadd.s32 1, %s913_s27  }
 0x35f   : > { %p15_p4 = scmp.ge.s32.totalorder %s18_s27, 4  }
 0x361   :  { %17 = sbr.rel (!%p15_p4) target bundleno = 1 (0x1), region = 82 }

</bundles_post_ra>
